<compile_context>
chip_gen: v7x
topology: tpu7x:2x2x1
jax: 0.10.0
libtpu: 0.0.40
codegen_flags: <defaults>
</compile_context>

<pallas_src>
import jax
import jax.numpy as jnp
from jax.experimental import pallas as pl
from jax.experimental.pallas import tpu as pltpu


def _round_up(x, m):
    return ((x + m - 1) // m) * m


# ---------------------------------------------------------------------------
# Kernel: one TM-row tile of the per-token dense projection.
#   emb_ref: VMEM [TM, E]     bf16   (gathered, mask-folded embeddings)
#   w_ref:   VMEM [E, C_pad]  bf16   (grid-invariant)
#   b_ref:   VMEM [1, C_pad]  f32    (grid-invariant)
#   out_ref: VMEM [TM, C_pad] f32
# ---------------------------------------------------------------------------
def _dense_kernel(emb_ref, w_ref, b_ref, out_ref):
    acc = jnp.dot(emb_ref[...], w_ref[...],
                  preferred_element_type=jnp.float32)
    out_ref[...] = acc + b_ref[...]


# ---------------------------------------------------------------------------
# Wrapper: mask folding, padding, tiling, pallas_call plumbing.
# ---------------------------------------------------------------------------
def fused_forward(ids, mask, emb_table_bf16, w_bf16, b_f32, *, tm_max=1024):
    """ids, mask: int32 [B, S]; emb_table: [V+1, E] bf16 (row V all-zero);
    w: [E, C] bf16; b: [C] f32  ->  logits f32 [B, S, C]."""
    B, S = ids.shape
    Vp1, E = emb_table_bf16.shape
    V = Vp1 - 1                              # sentinel all-zero row
    C = w_bf16.shape[1]

    M = B * S
    TM = min(tm_max, _round_up(M, 8))        # row tile, multiple of 8 sublanes
    M_pad = _round_up(M, TM)
    C_pad = _round_up(C, 128)                # lane-dense output (full vst)

    # Fold the attention mask into the gather: masked positions (and the
    # padding rows) read the all-zero sentinel row -> zero embeddings, which is
    # exactly `embeddings * mask` since mask is a per-row 0/1 scalar.
    ids_flat = jnp.where(mask.reshape(-1) != 0,
                         ids.reshape(-1), V).astype(jnp.int32)
    ids_flat = jnp.pad(ids_flat, (0, M_pad - M), constant_values=V)

    # Embedding row gather in XLA: for small E a per-row in-kernel DMA gather
    # is descriptor-bound (64 B payload per descriptor at E=32); the streamed
    # [M, E] slab hits the HBM bandwidth roofline instead.
    emb = emb_table_bf16[ids_flat]           # [M_pad, E] bf16

    w_pad = jnp.pad(w_bf16, ((0, 0), (0, C_pad - C)))
    b_pad = jnp.pad(b_f32, (0, C_pad - C)).reshape(1, C_pad)

    grid = (M_pad // TM,)

    # Actual VMEM footprint (double-buffered streaming inputs/outputs plus the
    # grid-invariant weight/bias) + headroom, capped well below a v7x core's
    # 64 MiB of physical VMEM.
    vmem_bytes = 2 * (TM * E * 2 + TM * C_pad * 4) + 2 * (E * C_pad * 2 + C_pad * 4)
    vmem_limit = int(min(32 * 1024 * 1024, vmem_bytes + 16 * 1024 * 1024))

    flops = 2 * M_pad * E * C_pad
    bytes_accessed = (M_pad * E * 2          # embedding slab (bf16)
                      + E * C_pad * 2        # weights (bf16)
                      + C_pad * 4            # bias
                      + M_pad * C_pad * 4)   # logits (f32)

    logits_pad = pl.pallas_call(
        _dense_kernel,
        out_shape=jax.ShapeDtypeStruct((M_pad, C_pad), jnp.float32),
        grid_spec=pltpu.PrefetchScalarGridSpec(
            num_scalar_prefetch=0,
            grid=grid,
            in_specs=[
                pl.BlockSpec((TM, E), lambda i: (i, 0)),        # embeddings
                pl.BlockSpec((E, C_pad), lambda i: (0, 0)),     # weights
                pl.BlockSpec((1, C_pad), lambda i: (0, 0)),     # bias
            ],
            out_specs=pl.BlockSpec((TM, C_pad), lambda i: (i, 0)),
        ),
        compiler_params=pltpu.CompilerParams(
            dimension_semantics=("parallel",),   # row tiles are independent
            vmem_limit_bytes=vmem_limit,
        ),
        cost_estimate=pl.CostEstimate(
            flops=flops, transcendentals=0, bytes_accessed=bytes_accessed),
    )(emb, w_pad, b_pad)

    return logits_pad[:M, :C].reshape(B, S, C)


# ---------------------------------------------------------------------------
# Model wrapper (parameters + call)
# ---------------------------------------------------------------------------
class LangModelWithDensePallas:
    def __init__(self, key, vocab_size, emb_size, num_classes):
        k_emb, k_w, k_b = jax.random.split(key, 3)
        # TODO(synk): the arbitrary external `lang_model` (e.g. a BERT stack)
        # is not translatable; a deterministic embedding-lookup stand-in
        # (emb_table[x] * mask) provides the [B, S, E] embeddings.
        emb_f32 = jax.random.normal(k_emb, (vocab_size, emb_size),
                                    dtype=jnp.float32) * 0.02
        # Append an all-zero sentinel row (index vocab_size) used to fold the
        # attention mask / padding into the gather.
        emb_f32 = jnp.concatenate(
            [emb_f32, jnp.zeros((1, emb_size), jnp.float32)], axis=0)
        # nn.Linear(emb_size, num_classes): stored transposed as [E, C].
        bound = 1.0 / float(emb_size) ** 0.5
        w_f32 = jax.random.uniform(k_w, (emb_size, num_classes),
                                   minval=-bound, maxval=bound,
                                   dtype=jnp.float32)
        self.emb_table = emb_f32.astype(jnp.bfloat16)   # bf16 halves table BW
        self.w = w_f32.astype(jnp.bfloat16)             # bf16 MXU operand
        self.b = jax.random.uniform(k_b, (num_classes,),
                                    minval=-bound, maxval=bound,
                                    dtype=jnp.float32)
        self.vocab_size = vocab_size
        self.num_classes = num_classes
        self.emb_size = emb_size

    def __call__(self, x, mask):
        # nn.Dropout(0.1) in eval mode == identity.
        return fused_forward(x, mask, self.emb_table, self.w, self.b)


# ---------------------------------------------------------------------------
# Pure-jnp reference (same bf16-rounded parameters, f32 math)
# ---------------------------------------------------------------------------
def reference_forward(model, x, mask):
    table = model.emb_table.astype(jnp.float32)[: model.vocab_size]
    emb = table[x] * mask[..., None].astype(jnp.float32)
    return jnp.einsum("bse,ec->bsc", emb,
                      model.w.astype(jnp.float32)) + model.b


if __name__ == "__main__":
    key = jax.random.PRNGKey(0)
    k_model, k_x = jax.random.split(key)

    batch_size, seq_len = 2, 8
    vocab_size, emb_size, num_classes = 64, 32, 8

    model = LangModelWithDensePallas(k_model, vocab_size, emb_size, num_classes)

    x = jax.random.randint(k_x, (batch_size, seq_len), 0, vocab_size,
                           dtype=jnp.int32)
    mask = jnp.ones((batch_size, seq_len), dtype=jnp.int32)
    mask = mask.at[1, -1].set(0)  # one masked position, as in the docstring

    logits = jax.block_until_ready(model(x, mask))

    ref = reference_forward(model, x, mask)
    assert logits.shape == (batch_size, seq_len, num_classes)
    assert jnp.allclose(logits, ref, atol=1e-4, rtol=1e-4), (
        float(jnp.max(jnp.abs(logits - ref))))

    print("KERNEL_OK")
</pallas_src>

<mosaic_0001>
module attributes {stable_mosaic.version = 11 : i64} {
  func.func @_dense_kernel(%arg0: i32, %arg1: memref<16x32xbf16, #tpu.memory_space<vmem>>, %arg2: memref<32x128xbf16, #tpu.memory_space<vmem>>, %arg3: memref<1x128xf32, #tpu.memory_space<vmem>>, %arg4: memref<16x128xf32, #tpu.memory_space<vmem>>) attributes {dimension_semantics = [#tpu.dimension_semantics<parallel>], iteration_bounds = array<i64: 1>, scalar_prefetch = 0 : i64, scratch_operands = 0 : i64, tpu.core_type = #tpu.core_type<tc>, window_params = [{transform_indices = @transform_0, window_bounds = array<i64: 16, 32>}, {pipeline_mode = #tpu.pipeline_mode<synchronous>, transform_indices = @transform_1, window_bounds = array<i64: 32, 128>}, {pipeline_mode = #tpu.pipeline_mode<synchronous>, transform_indices = @transform_2, window_bounds = array<i64: 1, 128>}, {transform_indices = @transform_3, window_bounds = array<i64: 16, 128>}]} {
    %c0 = arith.constant 0 : index
    %c0_0 = arith.constant 0 : index
    %0 = vector.load %arg1[%c0, %c0_0] : memref<16x32xbf16, #tpu.memory_space<vmem>>, vector<16x32xbf16>
    %c0_1 = arith.constant 0 : index
    %c0_2 = arith.constant 0 : index
    %1 = vector.load %arg2[%c0_1, %c0_2] : memref<32x128xbf16, #tpu.memory_space<vmem>>, vector<32x128xbf16>
    %cst = arith.constant dense<0.000000e+00> : vector<16x128xf32>
    %2 = tpu.matmul %0, %1, %cst {dimension_numbers = #tpu.dot_dimension_numbers<[1], [0], [0], [1], [0, 0, 1, 1], [], []>} : vector<16x32xbf16>, vector<32x128xbf16>, vector<16x128xf32> -> vector<16x128xf32>
    %c0_3 = arith.constant 0 : index
    %c0_4 = arith.constant 0 : index
    %3 = vector.load %arg3[%c0_3, %c0_4] : memref<1x128xf32, #tpu.memory_space<vmem>>, vector<1x128xf32>
    %4 = vector.broadcast %3 : vector<1x128xf32> to vector<16x128xf32>
    %5 = arith.addf %2, %4 : vector<16x128xf32>
    %c0_5 = arith.constant 0 : index
    %c0_6 = arith.constant 0 : index
    %6 = vector.load %arg4[%c0_5, %c0_6] : memref<16x128xf32, #tpu.memory_space<vmem>>, vector<16x128xf32>
    tpu.vector_store %arg4[%c0_5, %c0_6], %5 {strides = array<i32>} : memref<16x128xf32, #tpu.memory_space<vmem>>, vector<16x128xf32>,
    return
  }
  func.func @transform_0(%arg0: i32) -> (i32, i32) {
    %c0_i32 = arith.constant 0 : i32
    %c0_i32_0 = arith.constant 0 : i32
    return %arg0, %c0_i32 : i32, i32
  }
  func.func @transform_1(%arg0: i32) -> (i32, i32) {
    %c0_i32 = arith.constant 0 : i32
    %c0_i32_0 = arith.constant 0 : i32
    %c0_i32_1 = arith.constant 0 : i32
    return %c0_i32, %c0_i32_0 : i32, i32
  }
  func.func @transform_2(%arg0: i32) -> (i32, i32) {
    %c0_i32 = arith.constant 0 : i32
    %c0_i32_0 = arith.constant 0 : i32
    %c0_i32_1 = arith.constant 0 : i32
    return %c0_i32, %c0_i32_0 : i32, i32
  }
  func.func @transform_3(%arg0: i32) -> (i32, i32) {
    %c0_i32 = arith.constant 0 : i32
    %c0_i32_0 = arith.constant 0 : i32
    return %arg0, %c0_i32 : i32, i32
  }
}

</mosaic_0001>

<bundles_post_ra>
// kernel: tpu_custom_call.1
= control target key start
LH: loop header
LB: loop body
LE: loop exit
PB: predicated region body
PF: predicated region fallthrough
CT: control target
= control target key end

     0   :  { %8 = vsyncpa [#allocation3], 0  ;;  %s307_s0 = inlined_call_operand.hbm [shape: bf16[16,32], index: 0, kind: input, shape index: {}]   ;;  %s308_s1 = inlined_call_operand.hbm [shape: bf16[32,128], index: 1, kind: input, shape index: {}]   ;;  %s309_s2 = inlined_call_operand.vmem [shape: f32[1,128], index: 2, kind: input, shape index: {}]   ;;  %s310_s3 = inlined_call_operand.hbm [shape: f32[16,128], index: 3, kind: output, shape index: {}]  }
   0x1   :  { %9 = vsyncpa [#allocation6], 0 }
   0x2   :  { %10 = vsyncpa [#allocation4], 0  ;;  %s239_s12 = smov [#allocation2]   ;;  %s167_s16 = scalar_lea.hbm %s307_s0, 128 }
   0x3   :  { %s16_s13 = sshll.u32 %s239_s12, 4  ;;  %p168_p0 = scmp.ne.s32.totalorder %s307_s0, %s167_s16  ;;  %s17_s13 = int_to_ptr.vmem [resolvable:$true] %s16_s13 }
   0x4   :  { %p171_p1 = scmp.lt.u32.totalorder %s167_s16, %s307_s0 }
   0x6   :  { %p173_p2 = pnand %p171_p1, %p168_p0 }
   0x8   :  { %176 = shalt.err (!%p173_p2)
}
   0x9   :  { %s177_s21 = scalar_lea.vmem %s17_s13, 128  ;;  %p182_p4 = scmp.lt.s32.totalorder %s17_s13, %s17_s13 }
   0xa   :  { %p178_p3 = scmp.ne.s32.totalorder %s17_s13, %s177_s21  ;;  %p183_p5 = scmp.lt.s32.totalorder %s177_s21, %s177_s21 }
   0xc   :  { %p184_p6 = por %p183_p5, %p182_p4 }
   0xe   :  { %p185_p7 = pnand %p184_p6, %p178_p3 }
  0x10   :  { %188 = shalt.err (!%p185_p7)
}
  0x11   :  { %s240_s22 = smov 64   ;;  %s241_s23 = smov 4  }
  0x12   :  { %22 = dma.hbm_to_vmem [thread:$0]  %s307_s0, 128, %s17_s13, [#allocation3], %s240_s22, %s240_s22, %s241_s23  }
  0x13   :  { %s242_s26 = smov [#allocation5]   ;;  %s189_s30 = scalar_lea.hbm %s308_s1, 256 }
  0x14   :  { %s28_s27 = sshll.u32 %s242_s26, 4  ;;  %p190_p8 = scmp.ne.s32.totalorder %s308_s1, %s189_s30  ;;  %s29_s27 = int_to_ptr.vmem [resolvable:$true] %s28_s27 }
  0x15   :  { %p193_p9 = scmp.lt.u32.totalorder %s189_s30, %s308_s1 }
  0x17   :  { %p195_p10 = pnand %p193_p9, %p190_p8 }
  0x19   :  { %198 = shalt.err (!%p195_p10)
}
  0x1a   :  { %s199_s8 = scalar_lea.vmem %s29_s27, 256  ;;  %p204_p12 = scmp.lt.s32.totalorder %s29_s27, %s29_s27 }
  0x1b   :  { %p200_p11 = scmp.ne.s32.totalorder %s29_s27, %s199_s8  ;;  %p205_p13 = scmp.lt.s32.totalorder %s199_s8, %s199_s8 }
  0x1d   :  { %p206_p0 = por %p205_p13, %p204_p12 }
  0x1f   :  { %p207_p1 = pnand %p206_p0, %p200_p11 }
  0x21   :  { %210 = shalt.err (!%p207_p1)
}
  0x22   :  { %34 = dma.hbm_to_vmem [thread:$0]  %s308_s1, 256, %s29_s27, [#allocation6], %s240_s22, %s240_s22, %s241_s23  }
  0x23   :  { %233 = dma.done.wait [#allocation3], 128  }
  0x24   :  { %234 = vsyncadd [#allocation3], 4294967168 }
  0x25   :  { %235 = dma.done.wait [#allocation6], 256  }
  0x26   :  { %236 = vsyncadd [#allocation6], 4294967040  ;;  %v243_v0 = vmov 0.0   ;;  %vm244_vm0 = vmmov 0   ;;  %v164_v1 = vld [vmem:[#allocation5] sm:$0xff]   ;;  %v165_v2 = vld [vmem:[#allocation5 + $0x8] sm:$0xff]  }
  0x27   :  { %147 = vmatprep.subr.bf16.mxu0 %v243_v0  ;;  %151 = vmatprep.mubr.msk.bf16.mxu0 %vm244_vm0, %v243_v0  ;;  %v166_v3 = vld [vmem:[#allocation2] sm:$0xff]   ;;  %vm74_vm1 = vcmask 261120   ;;  %s245_s1 = smov [#allocation7]  }
  0x28   :  { %148 = vmatpush3.bf16.msra.mxu0 %v164_v1  ;;  %v139_v4 = vld [vmem:[%s309_s2] ss:$0 sm:$0xff]  ;;  %s126_s12 = sshll.u32 %s245_s1, 4  ;;  %s127_s12 = int_to_ptr.vmem [resolvable:$true] %s126_s12 }
  0x29   :  { %149 = vmatprep.subr.bf16.mxu0 %v243_v0  ;;  %s211_s13 = scalar_lea.vmem %s127_s12, 256  ;;  %p216_p3 = scmp.lt.s32.totalorder %s127_s12, %s127_s12 }
  0x2a   :  { %p212_p2 = scmp.ne.s32.totalorder %s127_s12, %s211_s13  ;;  %p217_p4 = scmp.lt.s32.totalorder %s211_s13, %s211_s13 }
  0x2c   :  { %150 = vmatpush3.bf16.msra.mxu0 %v165_v2  ;;  %p218_p5 = por %p217_p4, %p216_p3 }
  0x2e   :  { %p219_p6 = pnand %p218_p5, %p212_p2 }
  0x2f   :  { %152 = vmatmul.mubr.msk.bf16.vlgmr.msra.gmra.mrb[0].mxu0 %vm74_vm1, %v166_v3 }
 0x102   :  { %v112_v5 = vpop.f32.mrb[0].mxu0 }
 0x103   :  { %v113_v6 = vadd.f32 %v139_v4, %v112_v5  ;;  %v153_v7 = vpop.f32.mrb[1].mxu0 }
 0x104   :  { %v115_v8 = vpop.f32.mrb[2].mxu0 }
 0x105   :  { %119 = vst [vmem:[#allocation7] sm:$0xff] %v113_v6  ;;  %v116_v9 = vadd.f32 %v139_v4, %v115_v8  ;;  %v154_v10 = vpop.f32.mrb[3].mxu0 }
 0x107   :  { %120 = vst [vmem:[#allocation7 + $0x8] sm:$0xff] %v116_v9 }
 0x108   :  { %222 = shalt.err (!%p219_p6)
}
 0x109   :  { %s223_s15 = scalar_lea.hbm %s310_s3, 256 }
 0x10a   :  { %p224_p7 = scmp.ne.s32.totalorder %s310_s3, %s223_s15  ;;  %p227_p8 = scmp.lt.u32.totalorder %s223_s15, %s310_s3 }
 0x10c   :  { %p229_p9 = pnand %p227_p8, %p224_p7 }
 0x10e   :  { %232 = shalt.err (!%p229_p9)
}
 0x10f   :  { %s246_s20 = smov 128   ;;  %s247_s21 = smov 8  }
 0x110   :  { %132 = dma.vmem_to_hbm [thread:$0]  %s127_s12, 256, %s310_s3, [#allocation4], %s246_s20, %s246_s20, %s247_s21  }
 0x111   :  { %237 = dma.done.wait [#allocation4], 256  }
 0x112   :  { %238 = vsyncadd [#allocation4], 4294967040 }
 0x113   :  { %136 = vsyncpa [#allocation3], 1 }
 0x114   :  { %137 = vsyncpa [#allocation6], 1 }
 0x115   :  { %138 = vsyncpa [#allocation4], 1 }

</bundles_post_ra>
